<compile_context>
chip_gen: v5e
topology: v5e:2x2
jax: 0.10.0
libtpu: 0.0.40
codegen_flags: <defaults>
</compile_context>

<pallas_src>
import functools

import jax
import jax.numpy as jnp
from jax.experimental import pallas as pl
from jax.experimental.pallas import tpu as pltpu


def _round_up(n, m):
    return ((n + m - 1) // m) * m


def pack_mlp_params(w1, b1, w2, b2, *, hidden_tile=512):
    """One-time parameter packing (call once, reuse across forwards).

    w1: (hidden, in)  PyTorch Linear layout (out_features, in_features)
    b1: (hidden,)
    w2: (out, hidden)
    b2: (out,)
    Returns (w1_p, b1_p, w2_p, b2_p):
      w1_p: (in,  hid_p) bf16   b1_p: (1, hid_p) f32
      w2_p: (hid_p, out) bf16   b2_p: (1, out)   f32
    hid_p is the hidden size padded to a multiple of the hidden tile so the
    hidden grid axis divides evenly.  Zero padding is exact: padded hidden
    columns give relu(0 + 0) = 0 and hit zero rows of W2.
    """
    hidden, _in_f = w1.shape
    th = min(hidden_tile, _round_up(hidden, 128))
    hid_p = _round_up(hidden, th)

    w1_p = jnp.pad(w1.T.astype(jnp.bfloat16), ((0, 0), (0, hid_p - hidden)))
    b1_p = jnp.pad(b1.astype(jnp.float32)[None, :], ((0, 0), (0, hid_p - hidden)))
    w2_p = jnp.pad(w2.T.astype(jnp.bfloat16), ((0, hid_p - hidden), (0, 0)))
    b2_p = b2.astype(jnp.float32)[None, :]
    return w1_p, b1_p, w2_p, b2_p


def mlp_kernel(x_ref, w1_ref, b1_ref, w2_ref, b2_ref, o_ref, acc_ref):
    k = pl.program_id(1)

    @pl.when(k == 0)
    def _():
        acc_ref[...] = jnp.zeros_like(acc_ref)

    # h_k = relu(x @ W1[:, k-tile] + b1[k-tile]): bf16 MXU, f32 accumulation.
    h = jnp.dot(x_ref[...].astype(jnp.bfloat16), w1_ref[...],
                preferred_element_type=jnp.float32)
    # Bias + ReLU epilogue in f32 (no bf16 VPU dependence -> v5e-safe).
    h = jnp.maximum(h + b1_ref[...], 0.0)

    # acc += h_k @ W2[k-tile, :]
    acc_ref[...] += jnp.dot(h.astype(jnp.bfloat16), w2_ref[...],
                            preferred_element_type=jnp.float32)

    @pl.when(k == pl.num_programs(1) - 1)
    def _():
        o_ref[...] = (acc_ref[...] + b2_ref[...]).astype(o_ref.dtype)


@functools.partial(jax.jit, static_argnames=("block_batch", "hidden_tile"))
def mlp_forward(x, w1_p, b1_p, w2_p, b2_p, *, block_batch=256, hidden_tile=512):
    """Fused MLP forward on pre-packed parameters (see pack_mlp_params).

    x: (B, in) float32 -> returns (B, out) float32.
    """
    B, in_f = x.shape
    hid_p = w1_p.shape[1]
    out_f = w2_p.shape[1]

    # Hidden tile (reduction axis): must match the packing choice.
    th = min(hidden_tile, hid_p)
    assert hid_p % th == 0, "pack_mlp_params and mlp_forward must use the same hidden_tile"
    nk = hid_p // th

    # Batch tile: single full-extent block for small B (always layout-legal),
    # otherwise 128-aligned tiles with >=2 tiles so v7x megacore has work.
    if B <= 128:
        tb = B
    else:
        tb = min(block_batch, _round_up(pl.cdiv(B, 2), 128))
    nb = pl.cdiv(B, tb)

    # Explicit VMEM budget: double-buffered streamed tiles + f32 accumulator
    # + headroom for the (tb, th) f32 intermediate and lane padding.
    vmem_need = (
        2 * tb * in_f * 4          # x tile (f32), double-buffered
        + 2 * in_f * th * 2        # W1 tile (bf16), double-buffered
        + 2 * 8 * th * 4           # b1 tile (f32, sublane-padded)
        + 2 * th * out_f * 2       # W2 tile (bf16), double-buffered
        + 2 * 8 * out_f * 4        # b2 (f32)
        + 2 * tb * out_f * 4       # out tile (f32), double-buffered
        + tb * out_f * 4           # f32 accumulator scratch
        + tb * th * 4              # h intermediate (f32)
    )
    vmem_limit = int(min(vmem_need + (8 << 20), 96 << 20))

    cost = pl.CostEstimate(
        flops=2 * B * (in_f * hid_p + hid_p * out_f),
        transcendentals=0,
        bytes_accessed=(B * in_f * 4 + w1_p.size * 2 + w2_p.size * 2
                        + b1_p.size * 4 + b2_p.size * 4 + B * out_f * 4),
    )

    return pl.pallas_call(
        mlp_kernel,
        out_shape=jax.ShapeDtypeStruct((B, out_f), jnp.float32),
        grid=(nb, nk),
        in_specs=[
            # x: one batch tile, constant across k -> fetched once per i.
            pl.BlockSpec((tb, in_f), lambda i, k: (i, 0)),
            # W1 / b1 hidden tiles stream along the reduction axis.
            pl.BlockSpec((in_f, th), lambda i, k: (0, k)),
            pl.BlockSpec((1, th), lambda i, k: (0, k)),
            # W2 hidden tiles stream along the reduction axis.
            pl.BlockSpec((th, out_f), lambda i, k: (k, 0)),
            # b2: constant, VMEM-resident.
            pl.BlockSpec((1, out_f), lambda i, k: (0, 0)),
        ],
        # Output block is constant across k (accumulator pattern); written only
        # on the final k step.
        out_specs=pl.BlockSpec((tb, out_f), lambda i, k: (i, 0)),
        scratch_shapes=[pltpu.VMEM((tb, out_f), jnp.float32)],
        compiler_params=pltpu.CompilerParams(
            dimension_semantics=("parallel", "arbitrary"),
            vmem_limit_bytes=vmem_limit,
        ),
        cost_estimate=cost,
    )(x, w1_p, b1_p, w2_p, b2_p)


if __name__ == "__main__":
    # Small shapes consistent with MLP(input_size, hidden_size, output_size).
    batch, input_size, hidden_size, output_size = 8, 16, 32, 16

    key = jax.random.PRNGKey(0)
    k_x, k_w1, k_b1, k_w2, k_b2 = jax.random.split(key, 5)

    x = jax.random.normal(k_x, (batch, input_size), jnp.float32)

    # PyTorch-default-style init U(-1/sqrt(fan_in), +1/sqrt(fan_in)),
    # weights kept in PyTorch (out_features, in_features) layout.
    bound1 = 1.0 / (input_size ** 0.5)
    w1 = jax.random.uniform(k_w1, (hidden_size, input_size), jnp.float32,
                            minval=-bound1, maxval=bound1)
    b1 = jax.random.uniform(k_b1, (hidden_size,), jnp.float32,
                            minval=-bound1, maxval=bound1)
    bound2 = 1.0 / (hidden_size ** 0.5)
    w2 = jax.random.uniform(k_w2, (output_size, hidden_size), jnp.float32,
                            minval=-bound2, maxval=bound2)
    b2 = jax.random.uniform(k_b2, (output_size,), jnp.float32,
                            minval=-bound2, maxval=bound2)

    # One-time parameter packing (hoisted out of the per-forward path).
    packed = pack_mlp_params(w1, b1, w2, b2)
    packed = jax.block_until_ready(packed)

    out = mlp_forward(x, *packed)
    out = jax.block_until_ready(out)

    # Reference in plain f32 JAX (same math as the PyTorch forward).
    ref = jnp.maximum(x @ w1.T + b1, 0.0) @ w2.T + b2
    assert out.shape == (batch, output_size)
    # bf16 MXU operands -> bf16-appropriate tolerance vs. the f32 reference.
    assert jnp.allclose(out, ref, atol=5e-2, rtol=5e-2), \
        float(jnp.max(jnp.abs(out - ref)))

    print("KERNEL_OK")
</pallas_src>

<mosaic_0001>
module attributes {stable_mosaic.version = 11 : i64} {
  func.func @mlp_kernel(%arg0: i32, %arg1: i32, %arg2: memref<8x16xf32, #tpu.memory_space<vmem>>, %arg3: memref<16x128xbf16, #tpu.memory_space<vmem>>, %arg4: memref<1x128xf32, #tpu.memory_space<vmem>>, %arg5: memref<128x16xbf16, #tpu.memory_space<vmem>>, %arg6: memref<1x16xf32, #tpu.memory_space<vmem>>, %arg7: memref<8x16xf32, #tpu.memory_space<vmem>>, %arg8: memref<8x16xf32, #tpu.memory_space<vmem>>) attributes {dimension_semantics = [#tpu.dimension_semantics<parallel>, #tpu.dimension_semantics<arbitrary>], iteration_bounds = array<i64: 1, 1>, scalar_prefetch = 0 : i64, scratch_operands = 1 : i64, tpu.core_type = #tpu.core_type<tc>, window_params = [{transform_indices = @transform_0, window_bounds = array<i64: 8, 16>}, {transform_indices = @transform_1, window_bounds = array<i64: 16, 128>}, {transform_indices = @transform_2, window_bounds = array<i64: 1, 128>}, {transform_indices = @transform_3, window_bounds = array<i64: 128, 16>}, {pipeline_mode = #tpu.pipeline_mode<synchronous>, transform_indices = @transform_4, window_bounds = array<i64: 1, 16>}, {transform_indices = @transform_5, window_bounds = array<i64: 8, 16>}]} {
    %c0_i32 = arith.constant 0 : i32
    %0 = arith.cmpi eq, %arg1, %c0_i32 : i32
    %1 = arith.extui %0 : i1 to i32
    %c0_i32_0 = arith.constant 0 : i32
    %2 = arith.cmpi ne, %1, %c0_i32_0 : i32
    scf.if %2 {
      %cst_16 = arith.constant 0.000000e+00 : f32
      %21 = vector.broadcast %cst_16 : f32 to vector<8x16xf32>
      %c0_17 = arith.constant 0 : index
      %c0_18 = arith.constant 0 : index
      %22 = vector.load %arg8[%c0_17, %c0_18] : memref<8x16xf32, #tpu.memory_space<vmem>>, vector<8x16xf32>
      tpu.vector_store %arg8[%c0_17, %c0_18], %21 {strides = array<i32>} : memref<8x16xf32, #tpu.memory_space<vmem>>, vector<8x16xf32>,
    } else {
    }
    %c0 = arith.constant 0 : index
    %c0_1 = arith.constant 0 : index
    %3 = vector.load %arg2[%c0, %c0_1] : memref<8x16xf32, #tpu.memory_space<vmem>>, vector<8x16xf32>
    %4 = arith.truncf %3 : vector<8x16xf32> to vector<8x16xbf16>
    %c0_2 = arith.constant 0 : index
    %c0_3 = arith.constant 0 : index
    %5 = vector.load %arg3[%c0_2, %c0_3] : memref<16x128xbf16, #tpu.memory_space<vmem>>, vector<16x128xbf16>
    %cst = arith.constant dense<0.000000e+00> : vector<8x128xf32>
    %6 = tpu.matmul %4, %5, %cst {dimension_numbers = #tpu.dot_dimension_numbers<[1], [0], [0], [1], [0, 0, 1, 1], [], []>} : vector<8x16xbf16>, vector<16x128xbf16>, vector<8x128xf32> -> vector<8x128xf32>
    %c0_4 = arith.constant 0 : index
    %c0_5 = arith.constant 0 : index
    %7 = vector.load %arg4[%c0_4, %c0_5] : memref<1x128xf32, #tpu.memory_space<vmem>>, vector<1x128xf32>
    %8 = vector.broadcast %7 : vector<1x128xf32> to vector<8x128xf32>
    %9 = arith.addf %6, %8 : vector<8x128xf32>
    %cst_6 = arith.constant 0.000000e+00 : f32
    %10 = vector.broadcast %cst_6 : f32 to vector<8x128xf32>
    %11 = arith.maximumf %9, %10 : vector<8x128xf32>
    %c0_7 = arith.constant 0 : index
    %c0_8 = arith.constant 0 : index
    %12 = vector.load %arg8[%c0_7, %c0_8] : memref<8x16xf32, #tpu.memory_space<vmem>>, vector<8x16xf32>
    %13 = arith.truncf %11 : vector<8x128xf32> to vector<8x128xbf16>
    %c0_9 = arith.constant 0 : index
    %c0_10 = arith.constant 0 : index
    %14 = vector.load %arg5[%c0_9, %c0_10] : memref<128x16xbf16, #tpu.memory_space<vmem>>, vector<128x16xbf16>
    %cst_11 = arith.constant dense<0.000000e+00> : vector<8x16xf32>
    %15 = tpu.matmul %13, %14, %cst_11 {dimension_numbers = #tpu.dot_dimension_numbers<[1], [0], [0], [1], [0, 0, 1, 1], [], []>} : vector<8x128xbf16>, vector<128x16xbf16>, vector<8x16xf32> -> vector<8x16xf32>
    %16 = arith.addf %12, %15 : vector<8x16xf32>
    %c0_12 = arith.constant 0 : index
    %c0_13 = arith.constant 0 : index
    %17 = vector.load %arg8[%c0_12, %c0_13] : memref<8x16xf32, #tpu.memory_space<vmem>>, vector<8x16xf32>
    tpu.vector_store %arg8[%c0_12, %c0_13], %16 {strides = array<i32>} : memref<8x16xf32, #tpu.memory_space<vmem>>, vector<8x16xf32>,
    %c0_i32_14 = arith.constant 0 : i32
    %18 = arith.cmpi eq, %arg1, %c0_i32_14 : i32
    %19 = arith.extui %18 : i1 to i32
    %c0_i32_15 = arith.constant 0 : i32
    %20 = arith.cmpi ne, %19, %c0_i32_15 : i32
    scf.if %20 {
      %c0_16 = arith.constant 0 : index
      %c0_17 = arith.constant 0 : index
      %21 = vector.load %arg8[%c0_16, %c0_17] : memref<8x16xf32, #tpu.memory_space<vmem>>, vector<8x16xf32>
      %c0_18 = arith.constant 0 : index
      %c0_19 = arith.constant 0 : index
      %22 = vector.load %arg6[%c0_18, %c0_19] : memref<1x16xf32, #tpu.memory_space<vmem>>, vector<1x16xf32>
      %23 = vector.broadcast %22 : vector<1x16xf32> to vector<8x16xf32>
      %24 = arith.addf %21, %23 : vector<8x16xf32>
      %c0_20 = arith.constant 0 : index
      %c0_21 = arith.constant 0 : index
      %25 = vector.load %arg7[%c0_20, %c0_21] : memref<8x16xf32, #tpu.memory_space<vmem>>, vector<8x16xf32>
      tpu.vector_store %arg7[%c0_20, %c0_21], %24 {strides = array<i32>} : memref<8x16xf32, #tpu.memory_space<vmem>>, vector<8x16xf32>,
    } else {
    }
    return
  }
  func.func @transform_0(%arg0: i32, %arg1: i32) -> (i32, i32) {
    %c0_i32 = arith.constant 0 : i32
    %c0_i32_0 = arith.constant 0 : i32
    return %arg0, %c0_i32 : i32, i32
  }
  func.func @transform_1(%arg0: i32, %arg1: i32) -> (i32, i32) {
    %c0_i32 = arith.constant 0 : i32
    %c0_i32_0 = arith.constant 0 : i32
    return %c0_i32, %arg1 : i32, i32
  }
  func.func @transform_2(%arg0: i32, %arg1: i32) -> (i32, i32) {
    %c0_i32 = arith.constant 0 : i32
    %c0_i32_0 = arith.constant 0 : i32
    return %c0_i32, %arg1 : i32, i32
  }
  func.func @transform_3(%arg0: i32, %arg1: i32) -> (i32, i32) {
    %c0_i32 = arith.constant 0 : i32
    %c0_i32_0 = arith.constant 0 : i32
    return %arg1, %c0_i32 : i32, i32
  }
  func.func @transform_4(%arg0: i32, %arg1: i32) -> (i32, i32) {
    %c0_i32 = arith.constant 0 : i32
    %c0_i32_0 = arith.constant 0 : i32
    %c0_i32_1 = arith.constant 0 : i32
    return %c0_i32, %c0_i32_0 : i32, i32
  }
  func.func @transform_5(%arg0: i32, %arg1: i32) -> (i32, i32) {
    %c0_i32 = arith.constant 0 : i32
    %c0_i32_0 = arith.constant 0 : i32
    return %arg0, %c0_i32 : i32, i32
  }
}

</mosaic_0001>

<bundles_post_ra>
// kernel: mlp_forward.1
= control target key start
LH: loop header
LB: loop body
LE: loop exit
PB: predicated region body
PF: predicated region fallthrough
CT: control target
= control target key end

     0   :  { %vm26_vm0 = vcmask 130048   ;;  %v243_v3 = vmov 0.0   ;;  %s318_s0 = inlined_call_operand.vmem [shape: f32[8,16], index: 0, kind: input, shape index: {}]   ;;  %s319_s1 = inlined_call_operand.vmem [shape: bf16[16,128], index: 1, kind: input, shape index: {}]   ;;  %s320_s2 = inlined_call_operand.vmem [shape: f32[1,128], index: 2, kind: input, shape index: {}]   ;;  %s321_s3 = inlined_call_operand.vmem [shape: bf16[128,16], index: 3, kind: input, shape index: {}]   ;;  %s322_s4 = inlined_call_operand.vmem [shape: f32[1,16], index: 4, kind: input, shape index: {}]   ;;  %s323_s5 = inlined_call_operand.hbm [shape: f32[8,16], index: 5, kind: output, shape index: {}]  }
   0x1   :  { %v204_v0 = vld [vmem:[%s319_s1] sm:$0xff]  ;;  %v212_v2 = vld [vmem:[%s321_s3 + $0x38] sm:$0xff]  ;;  %27 = vst.msk [vmem:[#allocation2] sm:$0xff] %vm26_vm0, %v243_v3  ;;  %v211_v5 = vld [vmem:[%s321_s3 + $0x30] sm:$0xff] }
   0x2   :  { %v28_v1 = vld [vmem:[%s318_s0] sm:$0xff]  ;;  %53 = vmatpush.bf16.msra.mxu0 %v204_v0  ;;  %126 = vmatpush.bf16.msra.mxu1 %v212_v2 }
   0x3   :  { %v29_v4 = vpack.c.bf16 %v28_v1, %v28_v1 }
   0x4   :  { %10 = vsyncpa [#allocation4], 0  ;;  %v210_v6 = vld [vmem:[%s321_s3 + $0x28] sm:$0xff]  ;;  %v209_v7 = vld [vmem:[%s321_s3 + $0x20] sm:$0xff]  ;;  %s158_s17 = sshll.u32 %s323_s5, 4  ;;  %s159_s17 = int_to_ptr.hbm [resolvable:$true] %s158_s17 }
   0x5   :  { %171 = vmatmul.msk.bf16.vlgmr.msra.gmra.mxu0 %vm26_vm0, %v29_v4  ;;  %v208_v8 = vld [vmem:[%s321_s3 + $0x18] sm:$0xff]  ;;  %v207_v9 = vld [vmem:[%s321_s3 + $0x10] sm:$0xff]  ;;  %v206_v10 = vld [vmem:[%s321_s3 + $0x8] sm:$0xff] }
   0x6   :  { %127 = vmatpush.bf16.msra.mxu1 %v211_v5  ;;  %v205_v11 = vld [vmem:[%s321_s3] sm:$0xff]  ;;  %s244_s3 = smov [#allocation3]  }
   0x7   :  { %v215_v12 = vld [vmem:[%s320_s2] ss:$0 sm:$0xff]  ;;  %s156_s15 = sshll.u32 %s244_s3, 4  ;;  %s157_s15 = int_to_ptr.vmem [resolvable:$true] %s156_s15 }
   0x8   :  { %v60_v18 = vld [vmem:[#allocation2] sm:$0xff] }
   0x9   :  { %v216_v21 = vld [vmem:[%s322_s4] ss:$0 sm:$0xff] }
   0xa   :  { %128 = vmatpush.bf16.msra.mxu1 %v210_v6 }
   0xe   :  { %129 = vmatpush.bf16.msra.mxu1 %v209_v7 }
  0x12   :  { %130 = vmatpush.bf16.msra.mxu1 %v208_v8 }
  0x16   :  { %131 = vmatpush.bf16.msra.mxu1 %v207_v9 }
  0x1a   :  { %132 = vmatpush.bf16.msra.mxu1 %v206_v10 }
  0x1e   :  { %133 = vmatpush.bf16.msra.mxu1 %v205_v11 }
  0x82   :  { %v55_v13 = vpop.f32.mrf.mxu0 }
  0x83   :  { %v56_v14 = vadd.f32 %v215_v12, %v55_v13 }
  0x85   :  { %v59_v15 = vmax.f32 %v56_v14, 0.0 }
  0x87   :  { %v61_v16 = vpack.c.bf16 %v59_v15, %v59_v15 }
  0x89   :  { %134 = vmatmul.bf16.vlgmr.msra.gmra.mxu1 %v61_v16 }
  0x8a   :  { %v57_v17 = vpop.f32.mrf.mxu0 }
 0x106   :  { %v135_v19 = vpop.f32.mrf.mxu1 }
 0x107   :  { %v139_v20 = vadd.f32 %v135_v19, %v60_v18 }
 0x109   :  { %140 = vst.msk [vmem:[#allocation2] sm:$0xff] %vm26_vm0, %v139_v20 }
 0x10e   :  { %v137_v22 = vpop.f32.mrf.mxu1 }
 0x110   :  { %v144_v23 = vld [vmem:[#allocation2] sm:$0xff] }
 0x111   :  { %v149_v24 = vadd.f32 %v216_v21, %v144_v23 }
 0x113   :  { %150 = vst.msk [vmem:[#allocation3] sm:$0xff] %vm26_vm0, %v149_v24 }
 0x114   :  { %161 = dma.vmem_to_hbm [thread:$0]  %s157_s15, 128, %s159_s17, [#allocation4]  }
 0x115   :  { %241 = dma.done.wait [#allocation4], 128  }
 0x116   :  { %242 = vsyncadd [#allocation4], 4294967168 }
 0x117   :  { %166 = vsyncpa [#allocation4], 1 }

</bundles_post_ra>
